<compile_context>
chip_gen: v7x
topology: tpu7x:2x2x1
jax: 0.10.0
libtpu: 0.0.40
codegen_flags: <defaults>
</compile_context>

<pallas_src>
import jax
import jax.numpy as jnp
from jax.experimental import pallas as pl
from jax.experimental.pallas import tpu as pltpu


def _round_up(a, b):
    return (a + b - 1) // b * b


def _pick_tile(n, candidates):
    # n is always a multiple of 128; candidates end with 128.
    for c in candidates:
        if n % c == 0:
            return c
    return n


def _graphconv_kernel(a_ref, xn_ref, xr_ref, wrel_ref, wroot_ref, b_ref,
                      o_ref, acc_ref):
    """Grid = (row_blocks, neighbor_blocks).  Accumulate A@x, finalize on last k."""
    k = pl.program_id(1)

    @pl.when(k == 0)
    def _init():
        acc_ref[...] = jnp.zeros_like(acc_ref)

    # bf16 adjacency holds exact small-integer edge counts; upcast so the
    # aggregation itself is performed in full f32 (matches the reference).
    a = a_ref[...].astype(jnp.float32)                            # (tm, tk)
    acc_ref[...] += jnp.dot(a, xn_ref[...],
                            preferred_element_type=jnp.float32)   # (tm, Dp)

    @pl.when(k == pl.num_programs(1) - 1)
    def _finalize():
        # out = agg @ W_rel + x_root @ W_root + b   (two MXU matmuls, no concat copy)
        out = jnp.dot(acc_ref[...], wrel_ref[...],
                      preferred_element_type=jnp.float32)
        out += jnp.dot(xr_ref[...], wroot_ref[...],
                       preferred_element_type=jnp.float32)
        out += b_ref[...]                                          # (1, Op) broadcast
        # Dropout: module is evaluated in inference mode -> identity.
        # TODO(synk): training-mode dropout would use pltpu.prng_seed + stateful_bernoulli.
        o_ref[...] = out.astype(o_ref.dtype)


def build_dense_adjacency(edge_index, num_nodes):
    """Dense adjacency A[dst, src] = #edges src -> dst (counts duplicate edges).

    Built once in the wrapper (XLA scatter-add) so it can be reused across layers.
    """
    # TODO(synk): for large sparse graphs, replace the dense A@x path with a
    # PrefetchScalarGridSpec CSR gather kernel instead of an O(N^2) adjacency.
    src = edge_index[0]
    dst = edge_index[1]
    ones = jnp.ones(src.shape, jnp.float32)
    return jnp.zeros((num_nodes, num_nodes), jnp.float32).at[dst, src].add(ones)


def graph_conv_layer(x, edge_index, w_rel, w_root, b_rel):
    """Forward pass of GraphConvLayer (eval mode).

    x:          (N, D) float32 node features
    edge_index: (2, E) int32, row 0 = source nodes, row 1 = target nodes
    w_rel:      (D, O) float32  (lin_rel weight, stored transposed for x @ W)
    w_root:     (D, O) float32  (lin_root weight, transposed)
    b_rel:      (O,)   float32  (lin_rel bias)
    returns     (N, O) float32
    """
    # edge_index.squeeze(0) in the torch code is a no-op (result unused).
    N, D = x.shape
    O = w_rel.shape[1]

    adj = build_dense_adjacency(edge_index, N)

    # Pad everything to lane-dense, (8,128)-aligned shapes.
    Np = _round_up(max(N, 1), 128)
    Dp = _round_up(D, 128)
    Op = _round_up(O, 128)

    tm = _pick_tile(Np, (256, 128))        # row-block (128-aligned)
    tk = _pick_tile(Np, (512, 256, 128))   # neighbor reduction block (128-aligned)

    # bf16 adjacency: exact for edge multiplicities <= 256, halves HBM traffic.
    adj_p = jnp.zeros((Np, Np), jnp.bfloat16).at[:N, :N].set(adj.astype(jnp.bfloat16))
    x_p = jnp.zeros((Np, Dp), jnp.float32).at[:N, :D].set(x.astype(jnp.float32))

    w_rel_p = jnp.zeros((Dp, Op), jnp.float32).at[:D, :O].set(w_rel.astype(jnp.float32))
    w_root_p = jnp.zeros((Dp, Op), jnp.float32).at[:D, :O].set(w_root.astype(jnp.float32))
    b_p = jnp.zeros((1, Op), jnp.float32).at[0, :O].set(b_rel.astype(jnp.float32))

    grid = (Np // tm, Np // tk)

    # Conservative VMEM budget (double-buffered adjacency / neighbor tiles,
    # resident weights / root tile / accumulator), capped so the same shapes
    # stay safe on v7x's 64 MiB physical VMEM.
    per_buf = (tm * tk * 2          # bf16 adjacency tile
               + tk * Dp * 4        # neighbor x tile
               + tm * Dp * 4        # root x tile (resident across k)
               + 2 * Dp * Op * 4    # two weights (resident)
               + Op * 4             # bias
               + tm * Op * 4)       # output tile
    vmem_limit = int(min(max(2 * per_buf + tm * Dp * 4 + (2 << 20), 16 << 20), 64 << 20))

    out_p = pl.pallas_call(
        _graphconv_kernel,
        out_shape=jax.ShapeDtypeStruct((Np, Op), jnp.float32),
        grid_spec=pltpu.PrefetchScalarGridSpec(
            num_scalar_prefetch=0,
            grid=grid,
            in_specs=[
                pl.BlockSpec((tm, tk), lambda i, k: (i, k)),     # A row/col tile
                pl.BlockSpec((tk, Dp), lambda i, k: (k, 0)),     # x (neighbor rows)
                pl.BlockSpec((tm, Dp), lambda i, k: (i, 0)),     # x (root rows), k-invariant
                pl.BlockSpec((Dp, Op), lambda i, k: (0, 0)),     # W_rel (resident)
                pl.BlockSpec((Dp, Op), lambda i, k: (0, 0)),     # W_root (resident)
                pl.BlockSpec((1, Op), lambda i, k: (0, 0)),      # bias
            ],
            out_specs=pl.BlockSpec((tm, Op), lambda i, k: (i, 0)),
            scratch_shapes=[pltpu.VMEM((tm, Dp), jnp.float32)],  # f32 aggregation acc
        ),
        compiler_params=pltpu.CompilerParams(
            dimension_semantics=("parallel", "arbitrary"),
            vmem_limit_bytes=vmem_limit,
        ),
    )(adj_p, x_p, x_p, w_rel_p, w_root_p, b_p)

    return out_p[:N, :O]


def _reference(x, edge_index, w_rel, w_root, b_rel):
    # Pure-JAX reference of PyG GraphConv (aggr='add'), eval-mode dropout.
    src, dst = edge_index[0], edge_index[1]
    agg = jnp.zeros_like(x).at[dst].add(x[src])
    return agg @ w_rel + b_rel[None, :] + x @ w_root


if __name__ == "__main__":
    key = jax.random.PRNGKey(0)
    k_x, k_e, k_wr, k_wo, k_b = jax.random.split(key, 5)

    N = 16          # number of graph nodes
    E = 48          # number of edges
    input_dim = 8
    output_dim = 16

    x = jax.random.normal(k_x, (N, input_dim), dtype=jnp.float32)
    edge_index = jax.random.randint(k_e, (2, E), 0, N, dtype=jnp.int32)

    # Deterministic parameter init (glorot-like uniform), shapes from GraphConv(D, O).
    limit = (6.0 / (input_dim + output_dim)) ** 0.5
    w_rel = jax.random.uniform(k_wr, (input_dim, output_dim), jnp.float32, -limit, limit)
    w_root = jax.random.uniform(k_wo, (input_dim, output_dim), jnp.float32, -limit, limit)
    b_rel = jax.random.uniform(k_b, (output_dim,), jnp.float32, -0.1, 0.1)

    out = graph_conv_layer(x, edge_index, w_rel, w_root, b_rel)
    out = jax.block_until_ready(out)

    ref = _reference(x, edge_index, w_rel, w_root, b_rel)
    assert out.shape == (N, output_dim)
    assert jnp.allclose(out, ref, atol=1e-4, rtol=1e-4), "mismatch vs reference"

    print("KERNEL_OK")
</pallas_src>

<mosaic_0001>
module attributes {stable_mosaic.version = 11 : i64} {
  func.func @_graphconv_kernel(%arg0: i32, %arg1: i32, %arg2: memref<128x128xbf16, #tpu.memory_space<vmem>>, %arg3: memref<128x128xf32, #tpu.memory_space<vmem>>, %arg4: memref<128x128xf32, #tpu.memory_space<vmem>>, %arg5: memref<128x128xf32, #tpu.memory_space<vmem>>, %arg6: memref<128x128xf32, #tpu.memory_space<vmem>>, %arg7: memref<1x128xf32, #tpu.memory_space<vmem>>, %arg8: memref<128x128xf32, #tpu.memory_space<vmem>>, %arg9: memref<128x128xf32, #tpu.memory_space<vmem>>) attributes {dimension_semantics = [#tpu.dimension_semantics<parallel>, #tpu.dimension_semantics<arbitrary>], iteration_bounds = array<i64: 1, 1>, scalar_prefetch = 0 : i64, scratch_operands = 1 : i64, tpu.core_type = #tpu.core_type<tc>, window_params = [{transform_indices = @transform_0, window_bounds = array<i64: 128, 128>}, {transform_indices = @transform_1, window_bounds = array<i64: 128, 128>}, {transform_indices = @transform_2, window_bounds = array<i64: 128, 128>}, {pipeline_mode = #tpu.pipeline_mode<synchronous>, transform_indices = @transform_3, window_bounds = array<i64: 128, 128>}, {pipeline_mode = #tpu.pipeline_mode<synchronous>, transform_indices = @transform_4, window_bounds = array<i64: 128, 128>}, {pipeline_mode = #tpu.pipeline_mode<synchronous>, transform_indices = @transform_5, window_bounds = array<i64: 1, 128>}, {transform_indices = @transform_6, window_bounds = array<i64: 128, 128>}]} {
    %c0_i32 = arith.constant 0 : i32
    %0 = arith.cmpi eq, %arg1, %c0_i32 : i32
    %1 = arith.extui %0 : i1 to i32
    %c0_i32_0 = arith.constant 0 : i32
    %2 = arith.cmpi ne, %1, %c0_i32_0 : i32
    scf.if %2 {
      %cst_10 = arith.constant 0.000000e+00 : f32
      %13 = vector.broadcast %cst_10 : f32 to vector<128x128xf32>
      %c0_11 = arith.constant 0 : index
      %c0_12 = arith.constant 0 : index
      %14 = vector.load %arg9[%c0_11, %c0_12] : memref<128x128xf32, #tpu.memory_space<vmem>>, vector<128x128xf32>
      tpu.vector_store %arg9[%c0_11, %c0_12], %13 {strides = array<i32>} : memref<128x128xf32, #tpu.memory_space<vmem>>, vector<128x128xf32>,
    } else {
    }
    %c0 = arith.constant 0 : index
    %c0_1 = arith.constant 0 : index
    %3 = vector.load %arg2[%c0, %c0_1] : memref<128x128xbf16, #tpu.memory_space<vmem>>, vector<128x128xbf16>
    %4 = arith.extf %3 : vector<128x128xbf16> to vector<128x128xf32>
    %c0_2 = arith.constant 0 : index
    %c0_3 = arith.constant 0 : index
    %5 = vector.load %arg9[%c0_2, %c0_3] : memref<128x128xf32, #tpu.memory_space<vmem>>, vector<128x128xf32>
    %c0_4 = arith.constant 0 : index
    %c0_5 = arith.constant 0 : index
    %6 = vector.load %arg3[%c0_4, %c0_5] : memref<128x128xf32, #tpu.memory_space<vmem>>, vector<128x128xf32>
    %cst = arith.constant dense<0.000000e+00> : vector<128x128xf32>
    %7 = tpu.matmul %4, %6, %cst {dimension_numbers = #tpu.dot_dimension_numbers<[1], [0], [0], [1], [0, 0, 1, 1], [], []>} : vector<128x128xf32>, vector<128x128xf32>, vector<128x128xf32> -> vector<128x128xf32>
    %8 = arith.addf %5, %7 : vector<128x128xf32>
    %c0_6 = arith.constant 0 : index
    %c0_7 = arith.constant 0 : index
    %9 = vector.load %arg9[%c0_6, %c0_7] : memref<128x128xf32, #tpu.memory_space<vmem>>, vector<128x128xf32>
    tpu.vector_store %arg9[%c0_6, %c0_7], %8 {strides = array<i32>} : memref<128x128xf32, #tpu.memory_space<vmem>>, vector<128x128xf32>,
    %c0_i32_8 = arith.constant 0 : i32
    %10 = arith.cmpi eq, %arg1, %c0_i32_8 : i32
    %11 = arith.extui %10 : i1 to i32
    %c0_i32_9 = arith.constant 0 : i32
    %12 = arith.cmpi ne, %11, %c0_i32_9 : i32
    scf.if %12 {
      %c0_10 = arith.constant 0 : index
      %c0_11 = arith.constant 0 : index
      %13 = vector.load %arg9[%c0_10, %c0_11] : memref<128x128xf32, #tpu.memory_space<vmem>>, vector<128x128xf32>
      %c0_12 = arith.constant 0 : index
      %c0_13 = arith.constant 0 : index
      %14 = vector.load %arg5[%c0_12, %c0_13] : memref<128x128xf32, #tpu.memory_space<vmem>>, vector<128x128xf32>
      %cst_14 = arith.constant dense<0.000000e+00> : vector<128x128xf32>
      %15 = tpu.matmul %13, %14, %cst_14 {dimension_numbers = #tpu.dot_dimension_numbers<[1], [0], [0], [1], [0, 0, 1, 1], [], []>} : vector<128x128xf32>, vector<128x128xf32>, vector<128x128xf32> -> vector<128x128xf32>
      %c0_15 = arith.constant 0 : index
      %c0_16 = arith.constant 0 : index
      %16 = vector.load %arg4[%c0_15, %c0_16] : memref<128x128xf32, #tpu.memory_space<vmem>>, vector<128x128xf32>
      %c0_17 = arith.constant 0 : index
      %c0_18 = arith.constant 0 : index
      %17 = vector.load %arg6[%c0_17, %c0_18] : memref<128x128xf32, #tpu.memory_space<vmem>>, vector<128x128xf32>
      %cst_19 = arith.constant dense<0.000000e+00> : vector<128x128xf32>
      %18 = tpu.matmul %16, %17, %cst_19 {dimension_numbers = #tpu.dot_dimension_numbers<[1], [0], [0], [1], [0, 0, 1, 1], [], []>} : vector<128x128xf32>, vector<128x128xf32>, vector<128x128xf32> -> vector<128x128xf32>
      %19 = arith.addf %15, %18 : vector<128x128xf32>
      %c0_20 = arith.constant 0 : index
      %c0_21 = arith.constant 0 : index
      %20 = vector.load %arg7[%c0_20, %c0_21] : memref<1x128xf32, #tpu.memory_space<vmem>>, vector<1x128xf32>
      %21 = vector.broadcast %20 : vector<1x128xf32> to vector<128x128xf32>
      %22 = arith.addf %19, %21 : vector<128x128xf32>
      %c0_22 = arith.constant 0 : index
      %c0_23 = arith.constant 0 : index
      %23 = vector.load %arg8[%c0_22, %c0_23] : memref<128x128xf32, #tpu.memory_space<vmem>>, vector<128x128xf32>
      tpu.vector_store %arg8[%c0_22, %c0_23], %22 {strides = array<i32>} : memref<128x128xf32, #tpu.memory_space<vmem>>, vector<128x128xf32>,
    } else {
    }
    return
  }
  func.func @transform_0(%arg0: i32, %arg1: i32) -> (i32, i32) {
    %c0_i32 = arith.constant 0 : i32
    return %arg0, %arg1 : i32, i32
  }
  func.func @transform_1(%arg0: i32, %arg1: i32) -> (i32, i32) {
    %c0_i32 = arith.constant 0 : i32
    %c0_i32_0 = arith.constant 0 : i32
    return %arg1, %c0_i32 : i32, i32
  }
  func.func @transform_2(%arg0: i32, %arg1: i32) -> (i32, i32) {
    %c0_i32 = arith.constant 0 : i32
    %c0_i32_0 = arith.constant 0 : i32
    return %arg0, %c0_i32 : i32, i32
  }
  func.func @transform_3(%arg0: i32, %arg1: i32) -> (i32, i32) {
    %c0_i32 = arith.constant 0 : i32
    %c0_i32_0 = arith.constant 0 : i32
    %c0_i32_1 = arith.constant 0 : i32
    return %c0_i32, %c0_i32_0 : i32, i32
  }
  func.func @transform_4(%arg0: i32, %arg1: i32) -> (i32, i32) {
    %c0_i32 = arith.constant 0 : i32
    %c0_i32_0 = arith.constant 0 : i32
    %c0_i32_1 = arith.constant 0 : i32
    return %c0_i32, %c0_i32_0 : i32, i32
  }
  func.func @transform_5(%arg0: i32, %arg1: i32) -> (i32, i32) {
    %c0_i32 = arith.constant 0 : i32
    %c0_i32_0 = arith.constant 0 : i32
    %c0_i32_1 = arith.constant 0 : i32
    return %c0_i32, %c0_i32_0 : i32, i32
  }
  func.func @transform_6(%arg0: i32, %arg1: i32) -> (i32, i32) {
    %c0_i32 = arith.constant 0 : i32
    %c0_i32_0 = arith.constant 0 : i32
    return %arg0, %c0_i32 : i32, i32
  }
}

</mosaic_0001>

<bundles_post_ra>
// kernel: tpu_custom_call.1
= control target key start
LH: loop header
LB: loop body
LE: loop exit
PB: predicated region body
PF: predicated region fallthrough
CT: control target
= control target key end

     0   :  { %11 = vsyncpa [#allocation4], 0  ;;  %s1489_s0 = inlined_call_operand.hbm [shape: bf16[128,128], index: 0, kind: input, shape index: {}]   ;;  %s1490_s1 = inlined_call_operand.hbm [shape: f32[128,128], index: 1, kind: input, shape index: {}]   ;;  %s1491_s2 = inlined_call_operand.hbm [shape: f32[128,128], index: 2, kind: input, shape index: {}]   ;;  %s1492_s3 = inlined_call_operand.hbm [shape: f32[128,128], index: 3, kind: input, shape index: {}]   ;;  %s1493_s4 = inlined_call_operand.hbm [shape: f32[128,128], index: 4, kind: input, shape index: {}]   ;;  %s1494_s5 = inlined_call_operand.vmem [shape: f32[1,128], index: 5, kind: input, shape index: {}]   ;;  %s1495_s6 = inlined_call_operand.hbm [shape: f32[128,128], index: 6, kind: output, shape index: {}]  }
   0x1   :  { %12 = vsyncpa [#allocation7], 0 }
   0x2   :  { %13 = vsyncpa [#allocation10], 0 }
   0x3   :  { %14 = vsyncpa [#allocation5], 0  ;;  %s1350_s21 = smov [#allocation6]   ;;  %s1210_s25 = scalar_lea.hbm %s1490_s1, 2048 }
   0x4   :  { %s32_s22 = sshll.u32 %s1350_s21, 4  ;;  %p1211_p0 = scmp.ne.s32.totalorder %s1490_s1, %s1210_s25  ;;  %s33_s22 = int_to_ptr.vmem [resolvable:$true] %s32_s22 }
   0x5   :  { %p1214_p1 = scmp.lt.u32.totalorder %s1210_s25, %s1490_s1 }
   0x7   :  { %p1216_p2 = pnand %p1214_p1, %p1211_p0 }
   0x9   :  { %1219 = shalt.err (!%p1216_p2)
}
   0xa   :  { %s1220_s30 = scalar_lea.vmem %s33_s22, 2048  ;;  %p1225_p4 = scmp.lt.s32.totalorder %s33_s22, %s33_s22 }
   0xb   :  { %p1221_p3 = scmp.ne.s32.totalorder %s33_s22, %s1220_s30  ;;  %p1226_p5 = scmp.lt.s32.totalorder %s1220_s30, %s1220_s30 }
   0xd   :  { %p1227_p6 = por %p1226_p5, %p1225_p4 }
   0xf   :  { %p1228_p7 = pnand %p1227_p6, %p1221_p3 }
  0x11   :  { %1231 = shalt.err (!%p1228_p7)
}
  0x12   :  { %s1351_s7 = smov 128   ;;  %s1352_s8 = smov 8  }
  0x13   :  { %38 = dma.hbm_to_vmem [thread:$0]  %s1490_s1, 2048, %s33_s22, [#allocation7], %s1351_s7, %s1351_s7, %s1352_s8  }
  0x14   :  { %s1353_s11 = smov [#allocation9]   ;;  %s1354_s13 = smov [#allocation3]  }
  0x15   :  { %s56_s12 = sshll.u32 %s1353_s11, 4  ;;  %s20_s14 = sshll.u32 %s1354_s13, 4  ;;  %s57_s12 = int_to_ptr.vmem [resolvable:$true] %s56_s12  ;;  %s21_s14 = int_to_ptr.vmem [resolvable:$true] %s20_s14 }
  0x16   :  { %s1232_s17 = scalar_lea.hbm %s1492_s3, 2048 }
  0x17   :  { %p1233_p8 = scmp.ne.s32.totalorder %s1492_s3, %s1232_s17  ;;  %p1236_p9 = scmp.lt.u32.totalorder %s1232_s17, %s1492_s3 }
  0x19   :  { %p1238_p10 = pnand %p1236_p9, %p1233_p8 }
  0x1b   :  { %1241 = shalt.err (!%p1238_p10)
}
  0x1c   :  { %s1242_s1 = scalar_lea.vmem %s57_s12, 2048  ;;  %p1247_p12 = scmp.lt.s32.totalorder %s57_s12, %s57_s12 }
  0x1d   :  { %p1243_p11 = scmp.ne.s32.totalorder %s57_s12, %s1242_s1  ;;  %p1248_p13 = scmp.lt.s32.totalorder %s1242_s1, %s1242_s1 }
  0x1f   :  { %p1249_p0 = por %p1248_p13, %p1247_p12 }
  0x21   :  { %p1250_p1 = pnand %p1249_p0, %p1243_p11 }
  0x23   :  { %1253 = shalt.err (!%p1250_p1)
}
  0x24   :  { %62 = dma.hbm_to_vmem [thread:$0]  %s1492_s3, 2048, %s57_s12, [#allocation10], %s1351_s7, %s1351_s7, %s1352_s8  }
  0x25   :  { %s1254_s26 = scalar_lea.hbm %s1489_s0, 1024 }
  0x26   :  { %p1255_p2 = scmp.ne.s32.totalorder %s1489_s0, %s1254_s26  ;;  %p1258_p3 = scmp.lt.u32.totalorder %s1254_s26, %s1489_s0 }
  0x28   :  { %p1260_p4 = pnand %p1258_p3, %p1255_p2 }
  0x2a   :  { %1263 = shalt.err (!%p1260_p4)
}
  0x2b   :  { %s1264_s9 = scalar_lea.vmem %s21_s14, 1024  ;;  %p1269_p6 = scmp.lt.s32.totalorder %s21_s14, %s21_s14 }
  0x2c   :  { %p1265_p5 = scmp.ne.s32.totalorder %s21_s14, %s1264_s9  ;;  %p1270_p7 = scmp.lt.s32.totalorder %s1264_s9, %s1264_s9 }
  0x2e   :  { %p1271_p8 = por %p1270_p7, %p1269_p6 }
  0x30   :  { %p1272_p9 = pnand %p1271_p8, %p1265_p5 }
  0x32   :  { %1275 = shalt.err (!%p1272_p9)
}
  0x33   :  { %s1355_s3 = smov 64   ;;  %s1356_s10 = smov 4  }
  0x34   :  { %26 = dma.hbm_to_vmem [thread:$0]  %s1489_s0, 1024, %s21_s14, [#allocation4], %s1355_s3, %s1355_s3, %s1356_s10  }
  0x35   :  { %s1357_s13 = smov [#allocation8]   ;;  %s1358_s16 = smov [#allocation11]  }
  0x36   :  { %s44_s15 = sshll.u32 %s1357_s13, 4  ;;  %s68_s17 = sshll.u32 %s1358_s16, 4  ;;  %s45_s15 = int_to_ptr.vmem [resolvable:$true] %s44_s15  ;;  %s69_s17 = int_to_ptr.vmem [resolvable:$true] %s68_s17 }
  0x37   :  { %s1276_s20 = scalar_lea.hbm %s1491_s2, 2048 }
  0x38   :  { %p1277_p10 = scmp.ne.s32.totalorder %s1491_s2, %s1276_s20  ;;  %p1280_p11 = scmp.lt.u32.totalorder %s1276_s20, %s1491_s2 }
  0x3a   :  { %p1282_p12 = pnand %p1280_p11, %p1277_p10 }
  0x3c   :  { %1285 = shalt.err (!%p1282_p12)
}
  0x3d   :  { %s1286_s0 = scalar_lea.vmem %s45_s15, 2048  ;;  %p1291_p0 = scmp.lt.s32.totalorder %s45_s15, %s45_s15 }
  0x3e   :  { %p1287_p13 = scmp.ne.s32.totalorder %s45_s15, %s1286_s0  ;;  %p1292_p1 = scmp.lt.s32.totalorder %s1286_s0, %s1286_s0 }
  0x40   :  { %p1293_p2 = por %p1292_p1, %p1291_p0 }
  0x42   :  { %p1294_p3 = pnand %p1293_p2, %p1287_p13 }
  0x44   :  { %1297 = shalt.err (!%p1294_p3)
}
  0x45   :  { %50 = dma.hbm_to_vmem [thread:$0]  %s1491_s2, 2048, %s45_s15, [#allocation7], %s1351_s7, %s1351_s7, %s1352_s8  }
  0x46   :  { %s1298_s27 = scalar_lea.hbm %s1493_s4, 2048 }
  0x47   :  { %p1299_p4 = scmp.ne.s32.totalorder %s1493_s4, %s1298_s27  ;;  %p1302_p5 = scmp.lt.u32.totalorder %s1298_s27, %s1493_s4 }
  0x49   :  { %p1304_p6 = pnand %p1302_p5, %p1299_p4 }
  0x4b   :  { %1307 = shalt.err (!%p1304_p6)
}
  0x4c   :  { %s1308_s3 = scalar_lea.vmem %s69_s17, 2048  ;;  %p1313_p8 = scmp.lt.s32.totalorder %s69_s17, %s69_s17 }
  0x4d   :  { %p1309_p7 = scmp.ne.s32.totalorder %s69_s17, %s1308_s3  ;;  %p1314_p9 = scmp.lt.s32.totalorder %s1308_s3, %s1308_s3 }
  0x4f   :  { %p1315_p10 = por %p1314_p9, %p1313_p8 }
  0x51   :  { %p1316_p11 = pnand %p1315_p10, %p1309_p7 }
  0x53   :  { %1319 = shalt.err (!%p1316_p11)
}
  0x54   :  { %74 = dma.hbm_to_vmem [thread:$0]  %s1493_s4, 2048, %s69_s17, [#allocation10], %s1351_s7, %s1351_s7, %s1352_s8  }
  0x55   :  { %1342 = dma.done.wait [#allocation4], 1024  }
  0x56   :  { %1343 = vsyncadd [#allocation4], 4294966272 }
  0x57   :  { %1344 = dma.done.wait [#allocation7], 4096  }
  0x58   :  { %1345 = vsyncadd [#allocation7], 4294963200 }
  0x59   :  { %1346 = dma.done.wait [#allocation10], 4096  }
  0x5a   :  { %1347 = vsyncadd [#allocation10], 4294963200  ;;  %v160_v0 = vld [vmem:[#allocation6] sm:$0xff]  ;;  %v161_v1 = vld [vmem:[#allocation6 + $0x8] sm:$0xff] }
  0x5b   :  { %v162_v2 = vld [vmem:[#allocation6 + $0x10] sm:$0xff]  ;;  %v1072_v3 = vpack.c.bf16 %v161_v1, %v160_v0  ;;  %v163_v4 = vld [vmem:[#allocation6 + $0x18] sm:$0xff]  ;;  %v164_v6 = vld [vmem:[#allocation6 + $0x20] sm:$0xff] }
  0x5c   :  { %v1076_v5 = vpack.c.bf16 %v163_v4, %v162_v2  ;;  %v165_v7 = vld [vmem:[#allocation6 + $0x28] sm:$0xff]  ;;  %v1467_v9 = vld [vmem:[#allocation3] sm:$0xff]   ;;  %v166_v10 = vld [vmem:[#allocation6 + $0x30] sm:$0xff] }
  0x5d   :  { %1073 = vmatprep.subr.bf16.mxu0 %v1072_v3  ;;  %v1080_v8 = vpack.c.bf16 %v165_v7, %v164_v6  ;;  %v167_v11 = vld [vmem:[#allocation6 + $0x38] sm:$0xff]  ;;  %v771_v12 = vunpack.c.l.bf16 %v1467_v9  ;;  %v404_v13 = vld [vmem:[#allocation11] sm:$0xff]  ;;  %v405_v14 = vld [vmem:[#allocation11 + $0x8] sm:$0xff]  ;;  %v772_v54 = vunpack.c.h.bf16 %v1467_v9 }
  0x5e   :  { %1075 = vmatpush3.bf16.msra.mxu0 %v1072_v3  ;;  %v406_v15 = vld [vmem:[#allocation11 + $0x10] sm:$0xff]  ;;  %v1084_v16 = vpack.c.bf16 %v167_v11, %v166_v10  ;;  %v407_v17 = vld [vmem:[#allocation11 + $0x18] sm:$0xff]  ;;  %v168_v18 = vld [vmem:[#allocation6 + $0x40] sm:$0xff]  ;;  %v1104_v20 = vpack.c.bf16 %v405_v14, %v404_v13 }
  0x5f   :  { %1077 = vmatprep.subr.bf16.mxu0 %v1076_v5  ;;  %936 = vmatprep.mubr.f32.mxu0 %v771_v12  ;;  %v169_v19 = vld [vmem:[#allocation6 + $0x48] sm:$0xff]  ;;  %v1108_v21 = vpack.c.bf16 %v407_v17, %v406_v15  ;;  %v408_v22 = vld [vmem:[#allocation11 + $0x20] sm:$0xff]  ;;  %v170_v25 = vld [vmem:[#allocation6 + $0x50] sm:$0xff] }
  0x60   :  { %v409_v23 = vld [vmem:[#allocation11 + $0x28] sm:$0xff]  ;;  %1105 = vmatprep.subr.bf16.mxu1 %v1104_v20  ;;  %v1088_v24 = vpack.c.bf16 %v169_v19, %v168_v18  ;;  %v171_v26 = vld [vmem:[#allocation6 + $0x58] sm:$0xff]  ;;  %v410_v28 = vld [vmem:[#allocation11 + $0x30] sm:$0xff] }
  0x61   :  { %1107 = vmatpush3.bf16.msra.mxu1 %v1104_v20  ;;  %v1112_v27 = vpack.c.bf16 %v409_v23, %v408_v22  ;;  %v411_v29 = vld [vmem:[#allocation11 + $0x38] sm:$0xff]  ;;  %v388_v30 = vld [vmem:[#allocation8] sm:$0xff]  ;;  %v1092_v31 = vpack.c.bf16 %v171_v26, %v170_v25  ;;  %v173_v33 = vld [vmem:[#allocation6 + $0x68] sm:$0xff] }
  0x62   :  { %1079 = vmatpush3.bf16.msra.mxu0 %v1076_v5  ;;  %1109 = vmatprep.subr.bf16.mxu1 %v1108_v21  ;;  %v172_v32 = vld [vmem:[#allocation6 + $0x60] sm:$0xff]  ;;  %v1116_v34 = vpack.c.bf16 %v411_v29, %v410_v28  ;;  %v413_v36 = vld [vmem:[#allocation11 + $0x48] sm:$0xff]  ;;  %v174_v38 = vld [vmem:[#allocation6 + $0x70] sm:$0xff] }
  0x63   :  { %1081 = vmatprep.subr.bf16.mxu0 %v1080_v8  ;;  %992 = vmatprep.mubr.f32.mxu1 %v388_v30  ;;  %v412_v35 = vld [vmem:[#allocation11 + $0x40] sm:$0xff]  ;;  %v1096_v37 = vpack.c.bf16 %v173_v33, %v172_v32  ;;  %v175_v39 = vld [vmem:[#allocation6 + $0x78] sm:$0xff]  ;;  %v414_v41 = vld [vmem:[#allocation11 + $0x50] sm:$0xff] }
  0x64   :  { %v1120_v40 = vpack.c.bf16 %v413_v36, %v412_v35  ;;  %v415_v42 = vld [vmem:[#allocation11 + $0x58] sm:$0xff]  ;;  %v1100_v43 = vpack.c.bf16 %v175_v39, %v174_v38  ;;  %v372_v44 = vld [vmem:[#allocation9] sm:$0xff]  ;;  %v373_v45 = vld [vmem:[#allocation9 + $0x8] sm:$0xff] }
  0x65   :  { %1111 = vmatpush3.bf16.msra.mxu1 %v1108_v21  ;;  %v1124_v46 = vpack.c.bf16 %v415_v42, %v414_v41  ;;  %v416_v47 = vld [vmem:[#allocation11 + $0x60] sm:$0xff]  ;;  %v417_v48 = vld [vmem:[#allocation11 + $0x68] sm:$0xff]  ;;  %v1136_v50 = vpack.c.bf16 %v373_v45, %v372_v44  ;;  %v374_v51 = vld [vmem:[#allocation9 + $0x10] sm:$0xff] }
  0x66   :  { %1083 = vmatpush3.bf16.msra.mxu0 %v1080_v8  ;;  %1113 = vmatprep.subr.bf16.mxu1 %v1112_v27  ;;  %v801_v49 = vld [vmem:[#allocation3 + $0x8] sm:$0xff]   ;;  %v375_v52 = vld [vmem:[#allocation9 + $0x18] sm:$0xff]  ;;  %v1128_v53 = vpack.c.bf16 %v417_v48, %v416_v47  ;;  %v418_v55 = vld [vmem:[#allocation11 + $0x70] sm:$0xff] }
  0x67   :  { %1085 = vmatprep.subr.bf16.mxu0 %v1084_v16  ;;  %v419_v56 = vld [vmem:[#allocation11 + $0x78] sm:$0xff]  ;;  %v775_v57 = vunpack.c.l.bf16 %v801_v49  ;;  %v802_v58 = vld [vmem:[#allocation3 + $0x10] sm:$0xff]   ;;  %v1140_v59 = vpack.c.bf16 %v375_v52, %v374_v51  ;;  %v376_v60 = vld [vmem:[#allocation9 + $0x20] sm:$0xff]  ;;  %v776_v63 = vunpack.c.h.bf16 %v801_v49 }
  0x68   :  { %v377_v61 = vld [vmem:[#allocation9 + $0x28] sm:$0xff]  ;;  %v1132_v62 = vpack.c.bf16 %v419_v56, %v418_v55  ;;  %v779_v0 = vunpack.c.l.bf16 %v802_v58  ;;  %v803_v1 = vld [vmem:[#allocation3 + $0x18] sm:$0xff]   ;;  %v378_v3 = vld [vmem:[#allocation9 + $0x30] sm:$0xff]  ;;  %v780_v5 = vunpack.c.h.bf16 %v802_v58 }
  0x69   :  { %1115 = vmatpush3.bf16.msra.mxu1 %v1112_v27  ;;  %v1144_v2 = vpack.c.bf16 %v377_v61, %v376_v60  ;;  %v379_v4 = vld [vmem:[#allocation9 + $0x38] sm:$0xff]  ;;  %v783_v6 = vunpack.c.l.bf16 %v803_v1  ;;  %v804_v7 = vld [vmem:[#allocation3 + $0x20] sm:$0xff]   ;;  %v389_v9 = vld [vmem:[#allocation8 + $0x8] sm:$0xff]  ;;  %v784_v12 = vunpack.c.h.bf16 %v803_v1 }
  0x6a   :  { %1087 = vmatpush3.bf16.msra.mxu0 %v1084_v16  ;;  %1117 = vmatprep.subr.bf16.mxu1 %v1116_v34  ;;  %v1148_v8 = vpack.c.bf16 %v379_v4, %v378_v3  ;;  %v380_v10 = vld [vmem:[#allocation9 + $0x40] sm:$0xff]  ;;  %v381_v11 = vld [vmem:[#allocation9 + $0x48] sm:$0xff]  ;;  %v390_v13 = vld [vmem:[#allocation8 + $0x10] sm:$0xff]  ;;  %v787_v14 = vunpack.c.l.bf16 %v804_v7  ;;  %v788_v20 = vunpack.c.h.bf16 %v804_v7 }
  0x6b   :  { %1089 = vmatprep.subr.bf16.mxu0 %v1088_v24  ;;  %v805_v15 = vld [vmem:[#allocation3 + $0x28] sm:$0xff]   ;;  %v1152_v16 = vpack.c.bf16 %v381_v11, %v380_v10  ;;  %v391_v17 = vld [vmem:[#allocation8 + $0x18] sm:$0xff]  ;;  %v382_v18 = vld [vmem:[#allocation9 + $0x50] sm:$0xff] }
  0x6c   :  { %v383_v19 = vld [vmem:[#allocation9 + $0x58] sm:$0xff]  ;;  %v392_v21 = vld [vmem:[#allocation8 + $0x20] sm:$0xff]  ;;  %v791_v22 = vunpack.c.l.bf16 %v805_v15  ;;  %v806_v23 = vld [vmem:[#allocation3 + $0x30] sm:$0xff]   ;;  %v792_v28 = vunpack.c.h.bf16 %v805_v15 }
  0x6d   :  { %1119 = vmatpush3.bf16.msra.mxu1 %v1116_v34  ;;  %v393_v25 = vld [vmem:[#allocation8 + $0x28] sm:$0xff]  ;;  %v384_v26 = vld [vmem:[#allocation9 + $0x60] sm:$0xff]  ;;  %v394_v29 = vld [vmem:[#allocation8 + $0x30] sm:$0xff]  ;;  %v795_v30 = vunpack.c.l.bf16 %v806_v23  ;;  %v796_v36 = vunpack.c.h.bf16 %v806_v23 }
  0x6e   :  { %1091 = vmatpush3.bf16.msra.mxu0 %v1088_v24  ;;  %1121 = vmatprep.subr.bf16.mxu1 %v1120_v40  ;;  %v1156_v24 = vpack.c.bf16 %v383_v19, %v382_v18  ;;  %v385_v27 = vld [vmem:[#allocation9 + $0x68] sm:$0xff]  ;;  %v395_v33 = vld [vmem:[#allocation8 + $0x38] sm:$0xff]  ;;  %v386_v34 = vld [vmem:[#allocation9 + $0x70] sm:$0xff] }
  0x6f   :  { %1093 = vmatprep.subr.bf16.mxu0 %v1092_v31  ;;  %v1160_v32 = vpack.c.bf16 %v385_v27, %v384_v26  ;;  %v387_v35 = vld [vmem:[#allocation9 + $0x78] sm:$0xff]  ;;  %v397_v41 = vld [vmem:[#allocation8 + $0x48] sm:$0xff]  ;;  %v398_v42 = vld [vmem:[#allocation8 + $0x50] sm:$0xff] }
  0x70   :  { %v1164_v38 = vpack.c.bf16 %v387_v35, %v386_v34  ;;  %v400_v44 = vld [vmem:[#allocation8 + $0x60] sm:$0xff]  ;;  %v401_v45 = vld [vmem:[#allocation8 + $0x68] sm:$0xff]  ;;  %v403_v47 = vld [vmem:[#allocation8 + $0x78] sm:$0xff] }
  0x71   :  { %1123 = vmatpush3.bf16.msra.mxu1 %v1120_v40  ;;  %v396_v40 = vld [vmem:[#allocation8 + $0x40] sm:$0xff] }
  0x72   :  { %1095 = vmatpush3.bf16.msra.mxu0 %v1092_v31  ;;  %1125 = vmatprep.subr.bf16.mxu1 %v1124_v46  ;;  %v807_v31 = vld [vmem:[#allocation3 + $0x38] sm:$0xff]  }
  0x73   :  { %1097 = vmatprep.subr.bf16.mxu0 %v1096_v37  ;;  %v800_v39 = vunpack.c.h.bf16 %v807_v31 }
  0x75   :  { %1127 = vmatpush3.bf16.msra.mxu1 %v1124_v46  ;;  %v402_v46 = vld [vmem:[#allocation8 + $0x70] sm:$0xff] }
  0x76   :  { %1099 = vmatpush3.bf16.msra.mxu0 %v1096_v37  ;;  %1129 = vmatprep.subr.bf16.mxu1 %v1128_v53  ;;  %v799_v37 = vunpack.c.l.bf16 %v807_v31 }
  0x77   :  { %1101 = vmatprep.subr.bf16.mxu0 %v1100_v43 }
  0x79   :  { %1131 = vmatpush3.bf16.msra.mxu1 %v1128_v53 }
  0x7a   :  { %1103 = vmatpush3.bf16.msra.mxu0 %v1100_v43  ;;  %1133 = vmatprep.subr.bf16.mxu1 %v1132_v62  ;;  %v399_v43 = vld [vmem:[#allocation8 + $0x58] sm:$0xff] }
  0x7b   :  { %1137 = vmatprep.subr.bf16.mxu0 %v1136_v50 }
  0x7d   :  { %937 = vmatmul.mubr.f32.vlgmr.msra.gmra.mrb[0].mxu0 %v772_v54  ;;  %1135 = vmatpush3.bf16.msra.mxu1 %v1132_v62 }
  0x7e   :  { %939 = vmatprep.mubr.f32.mxu0 %v775_v57  ;;  %1139 = vmatpush3.bf16.msra.mxu0 %v1136_v50 }
  0x7f   :  { %1141 = vmatprep.subr.bf16.mxu0 %v1140_v59  ;;  %1168 = vmatprep.subr.bf16.mxu1 %v1136_v50 }
  0x80   :  { %993 = vmatmul.mubr.f32.vlgmr.msra.gmra.mrb[0].mxu1 %v389_v9  ;;  %v768_v9 = vld [vmem:[%s1494_s5] ss:$0 sm:$0xff]  ;;  %s1359_s5 = smov [#allocation12]  }
  0x81   :  { %940 = vmatmul.mubr.f32.gmra.mrb[2].mxu0 %v776_v63  ;;  %1176 = vmatpush3.bf16.msra.mxu1 %v1136_v50  ;;  %s754_s12 = sshll.u32 %s1359_s5, 4  ;;  %s755_s12 = int_to_ptr.vmem [resolvable:$true] %s754_s12 }
  0x82   :  { %942 = vmatprep.mubr.f32.mxu0 %v779_v0  ;;  %1143 = vmatpush3.bf16.msra.mxu0 %v1140_v59  ;;  %s1320_s13 = scalar_lea.vmem %s755_s12, 2048  ;;  %p1325_p13 = scmp.lt.s32.totalorder %s755_s12, %s755_s12 }
  0x83   :  { %1145 = vmatprep.subr.bf16.mxu0 %v1144_v2  ;;  %995 = vmatprep.mubr.f32.mxu1 %v390_v13  ;;  %p1321_p12 = scmp.ne.s32.totalorder %s755_s12, %s1320_s13  ;;  %p1326_p0 = scmp.lt.s32.totalorder %s1320_s13, %s1320_s13 }
  0x84   :  { %1169 = vmatprep.subr.bf16.mxu1 %v1140_v59  ;;  %996 = vmatmul.mubr.f32.gmra.mrb[2].mxu1 %v391_v17 }
  0x85   :  { %943 = vmatmul.mubr.f32.gmra.mrb[4].mxu0 %v780_v5  ;;  %1177 = vmatpush3.bf16.msra.mxu1 %v1140_v59  ;;  %p1327_p1 = por %p1326_p0, %p1325_p13 }
  0x86   :  { %945 = vmatprep.mubr.f32.mxu0 %v783_v6  ;;  %1147 = vmatpush3.bf16.msra.mxu0 %v1144_v2 }
  0x87   :  { %1149 = vmatprep.subr.bf16.mxu0 %v1148_v8  ;;  %998 = vmatprep.mubr.f32.mxu1 %v392_v21  ;;  %p1328_p2 = pnand %p1327_p1, %p1321_p12 }
  0x88   :  { %1170 = vmatprep.subr.bf16.mxu1 %v1144_v2  ;;  %999 = vmatmul.mubr.f32.gmra.mrb[4].mxu1 %v393_v25 }
  0x89   :  { %946 = vmatmul.mubr.f32.gmra.mrb[6].mxu0 %v784_v12  ;;  %1178 = vmatpush3.bf16.msra.mxu1 %v1144_v2 }
  0x8a   :  { %948 = vmatprep.mubr.f32.mxu0 %v787_v14  ;;  %1151 = vmatpush3.bf16.msra.mxu0 %v1148_v8 }
  0x8b   :  { %1153 = vmatprep.subr.bf16.mxu0 %v1152_v16  ;;  %1001 = vmatprep.mubr.f32.mxu1 %v394_v29 }
  0x8c   :  { %1171 = vmatprep.subr.bf16.mxu1 %v1148_v8  ;;  %1002 = vmatmul.mubr.f32.gmra.mrb[6].mxu1 %v395_v33 }
  0x8d   :  { %949 = vmatmul.mubr.f32.gmra.mrb[8].mxu0 %v788_v20  ;;  %1179 = vmatpush3.bf16.msra.mxu1 %v1148_v8 }
  0x8e   :  { %951 = vmatprep.mubr.f32.mxu0 %v791_v22  ;;  %1155 = vmatpush3.bf16.msra.mxu0 %v1152_v16 }
  0x8f   :  { %1157 = vmatprep.subr.bf16.mxu0 %v1156_v24  ;;  %1172 = vmatprep.subr.bf16.mxu1 %v1152_v16 }
  0x90   :  { %1004 = vmatprep.mubr.f32.mxu1 %v396_v40 }
  0x91   :  { %952 = vmatmul.mubr.f32.gmra.mrb[10].mxu0 %v792_v28  ;;  %1180 = vmatpush3.bf16.msra.mxu1 %v1152_v16 }
  0x92   :  { %954 = vmatprep.mubr.f32.mxu0 %v795_v30  ;;  %1159 = vmatpush3.bf16.msra.mxu0 %v1156_v24 }
  0x93   :  { %1161 = vmatprep.subr.bf16.mxu0 %v1160_v32  ;;  %1173 = vmatprep.subr.bf16.mxu1 %v1156_v24 }
  0x94   :  { %1005 = vmatmul.mubr.f32.gmra.mrb[8].mxu1 %v397_v41 }
  0x95   :  { %955 = vmatmul.mubr.f32.gmra.mrb[12].mxu0 %v796_v36  ;;  %1181 = vmatpush3.bf16.msra.mxu1 %v1156_v24 }
  0x96   :  { %957 = vmatprep.mubr.f32.mxu0 %v799_v37  ;;  %1163 = vmatpush3.bf16.msra.mxu0 %v1160_v32 }
  0x97   :  { %1165 = vmatprep.subr.bf16.mxu0 %v1164_v38  ;;  %1174 = vmatprep.subr.bf16.mxu1 %v1160_v32 }
  0x98   :  { %1007 = vmatprep.mubr.f32.mxu1 %v398_v42 }
  0x99   :  { %958 = vmatmul.mubr.f32.gmra.mrb[14].mxu0 %v800_v39  ;;  %1182 = vmatpush3.bf16.msra.mxu1 %v1160_v32 }
  0x9a   :  { %1167 = vmatpush3.bf16.msra.mxu0 %v1164_v38  ;;  %1175 = vmatprep.subr.bf16.mxu1 %v1164_v38 }
  0x9b   :  { %1008 = vmatmul.mubr.f32.gmra.mrb[10].mxu1 %v399_v43 }
  0x9c   :  { %1010 = vmatprep.mubr.f32.mxu1 %v400_v44 }
  0x9d   :  { %1183 = vmatpush3.bf16.msra.mxu1 %v1164_v38 }
  0x9f   :  { %1011 = vmatmul.mubr.f32.gmra.mrb[12].mxu1 %v401_v45 }
  0xa0   :  { %1013 = vmatprep.mubr.f32.mxu1 %v402_v46 }
  0xa3   :  { %1014 = vmatmul.mubr.f32.gmra.mrb[14].mxu1 %v403_v47 }
 0x150   :  { %v938_v48 = vpop.f32.mrb[0].mxu0 }
 0x151   :  { %v242_v49 = vpop.f32.mrb[1].mxu0 }
 0x152   :  { %1048 = vmatprep.mubr.f32.mxu0 %v242_v49 }
 0x153   :  { %1049 = vmatmul.mubr.f32.vlgmr.msra.gmra.mrb[16].mxu0 %v938_v48  ;;  %v994_v54 = vpop.f32.mrb[0].mxu1 }
 0x154   :  { %v941_v50 = vpop.f32.mrb[2].mxu0  ;;  %v486_v55 = vpop.f32.mrb[1].mxu1 }
 0x155   :  { %v252_v51 = vpop.f32.mrb[3].mxu0 }
 0x156   :  { %1051 = vmatprep.mubr.f32.mxu0 %v252_v51 }
 0x157   :  { %1052 = vmatmul.mubr.f32.gmra.mrb[18].mxu0 %v941_v50  ;;  %v997_v58 = vpop.f32.mrb[2].mxu1 }
 0x158   :  { %v944_v52 = vpop.f32.mrb[4].mxu0  ;;  %v496_v59 = vpop.f32.mrb[3].mxu1 }
 0x159   :  { %v262_v53 = vpop.f32.mrb[5].mxu0 }
 0x15a   :  { %1054 = vmatprep.mubr.f32.mxu0 %v262_v53 }
 0x15b   :  { %1055 = vmatmul.mubr.f32.gmra.mrb[20].mxu0 %v944_v52  ;;  %v1000_v62 = vpop.f32.mrb[4].mxu1 }
 0x15c   :  { %v947_v56 = vpop.f32.mrb[6].mxu0  ;;  %v506_v63 = vpop.f32.mrb[5].mxu1 }
 0x15d   :  { %v272_v57 = vpop.f32.mrb[7].mxu0 }
 0x15e   :  { %1057 = vmatprep.mubr.f32.mxu0 %v272_v57 }
 0x15f   :  { %1058 = vmatmul.mubr.f32.gmra.mrb[22].mxu0 %v947_v56  ;;  %v1003_v2 = vpop.f32.mrb[6].mxu1 }
 0x160   :  { %v950_v60 = vpop.f32.mrb[8].mxu0  ;;  %v516_v3 = vpop.f32.mrb[7].mxu1 }
 0x161   :  { %v282_v61 = vpop.f32.mrb[9].mxu0 }
 0x162   :  { %1060 = vmatprep.mubr.f32.mxu1 %v282_v61 }
 0x163   :  { %1061 = vmatmul.mubr.f32.vlgmr.msra.gmra.mrb[8].mxu1 %v950_v60 }
 0x164   :  { %v953_v0 = vpop.f32.mrb[10].mxu0 }
 0x165   :  { %v292_v1 = vpop.f32.mrb[11].mxu0 }
 0x166   :  { %1063 = vmatprep.mubr.f32.mxu1 %v292_v1 }
 0x167   :  { %1064 = vmatmul.mubr.f32.gmra.mrb[10].mxu1 %v953_v0 }
 0x168   :  { %v956_v4 = vpop.f32.mrb[12].mxu0 }
 0x169   :  { %v302_v5 = vpop.f32.mrb[13].mxu0 }
 0x16a   :  { %1066 = vmatprep.mubr.f32.mxu1 %v302_v5 }
 0x16b   :  { %1067 = vmatmul.mubr.f32.gmra.mrb[12].mxu1 %v956_v4 }
 0x16c   :  { %v959_v6 = vpop.f32.mrb[14].mxu0 }
 0x16d   :  { %v312_v7 = vpop.f32.mrb[15].mxu0 }
 0x16e   :  { %1069 = vmatprep.mubr.f32.mxu1 %v312_v7 }
 0x16f   :  { %1070 = vmatmul.mubr.f32.gmra.mrb[14].mxu1 %v959_v6 }
 0x226   :  { %v1050_v8 = vpop.f32.mrb[16].mxu0 }
 0x227   :  { %v637_v10 = vadd.f32 %v1050_v8, %v994_v54  ;;  %v631_v11 = vpop.f32.mrb[17].mxu0 }
 0x228   :  { %v632_v12 = vadd.f32 %v631_v11, %v486_v55 }
 0x229   :  { %v718_v13 = vadd.f32 %v768_v9, %v637_v10 }
 0x22a   :  { %v717_v14 = vadd.f32 %v768_v9, %v632_v12  ;;  %v1053_v15 = vpop.f32.mrb[18].mxu0 }
 0x22b   :  { %734 = vst [vmem:[#allocation12 + $0x8] sm:$0xff] %v718_v13  ;;  %v647_v16 = vadd.f32 %v1053_v15, %v997_v58  ;;  %v641_v17 = vpop.f32.mrb[19].mxu0 }
 0x22c   :  { %733 = vst [vmem:[#allocation12] sm:$0xff] %v717_v14  ;;  %v642_v18 = vadd.f32 %v641_v17, %v496_v59 }
 0x22d   :  { %v720_v19 = vadd.f32 %v768_v9, %v647_v16 }
 0x22e   :  { %v719_v20 = vadd.f32 %v768_v9, %v642_v18  ;;  %v1056_v21 = vpop.f32.mrb[20].mxu0 }
 0x22f   :  { %736 = vst [vmem:[#allocation12 + $0x18] sm:$0xff] %v720_v19  ;;  %v657_v22 = vadd.f32 %v1056_v21, %v1000_v62  ;;  %v651_v23 = vpop.f32.mrb[21].mxu0 }
 0x230   :  { %735 = vst [vmem:[#allocation12 + $0x10] sm:$0xff] %v719_v20  ;;  %v652_v24 = vadd.f32 %v651_v23, %v506_v63 }
 0x231   :  { %v722_v25 = vadd.f32 %v768_v9, %v657_v22 }
 0x232   :  { %v721_v26 = vadd.f32 %v768_v9, %v652_v24  ;;  %v1059_v27 = vpop.f32.mrb[22].mxu0 }
 0x233   :  { %738 = vst [vmem:[#allocation12 + $0x28] sm:$0xff] %v722_v25  ;;  %v667_v28 = vadd.f32 %v1059_v27, %v1003_v2  ;;  %v661_v29 = vpop.f32.mrb[23].mxu0 }
 0x234   :  { %737 = vst [vmem:[#allocation12 + $0x20] sm:$0xff] %v721_v26  ;;  %v662_v30 = vadd.f32 %v661_v29, %v516_v3 }
 0x235   :  { %v724_v31 = vadd.f32 %v768_v9, %v667_v28 }
 0x236   :  { %v723_v32 = vadd.f32 %v768_v9, %v662_v30  ;;  %v1062_v33 = vpop.f32.mrb[8].mxu1 }
 0x237   :  { %740 = vst [vmem:[#allocation12 + $0x38] sm:$0xff] %v724_v31  ;;  %v726_v34 = vadd.f32 %v1062_v33, %v768_v9  ;;  %v671_v35 = vpop.f32.mrb[9].mxu1 }
 0x238   :  { %739 = vst [vmem:[#allocation12 + $0x30] sm:$0xff] %v723_v32  ;;  %v725_v36 = vadd.f32 %v768_v9, %v671_v35 }
 0x239   :  { %742 = vst [vmem:[#allocation12 + $0x48] sm:$0xff] %v726_v34 }
 0x23a   :  { %741 = vst [vmem:[#allocation12 + $0x40] sm:$0xff] %v725_v36  ;;  %v1065_v37 = vpop.f32.mrb[10].mxu1 }
 0x23b   :  { %v728_v38 = vadd.f32 %v1065_v37, %v768_v9  ;;  %v681_v39 = vpop.f32.mrb[11].mxu1 }
 0x23c   :  { %v727_v40 = vadd.f32 %v768_v9, %v681_v39 }
 0x23d   :  { %744 = vst [vmem:[#allocation12 + $0x58] sm:$0xff] %v728_v38 }
 0x23e   :  { %743 = vst [vmem:[#allocation12 + $0x50] sm:$0xff] %v727_v40  ;;  %v1068_v41 = vpop.f32.mrb[12].mxu1 }
 0x23f   :  { %v730_v42 = vadd.f32 %v1068_v41, %v768_v9  ;;  %v691_v43 = vpop.f32.mrb[13].mxu1 }
 0x240   :  { %v729_v44 = vadd.f32 %v768_v9, %v691_v43 }
 0x241   :  { %746 = vst [vmem:[#allocation12 + $0x68] sm:$0xff] %v730_v42 }
 0x242   :  { %745 = vst [vmem:[#allocation12 + $0x60] sm:$0xff] %v729_v44  ;;  %v1071_v45 = vpop.f32.mrb[14].mxu1 }
 0x243   :  { %v732_v46 = vadd.f32 %v1071_v45, %v768_v9  ;;  %v701_v47 = vpop.f32.mrb[15].mxu1 }
 0x244   :  { %v731_v48 = vadd.f32 %v768_v9, %v701_v47 }
 0x245   :  { %748 = vst [vmem:[#allocation12 + $0x78] sm:$0xff] %v732_v46 }
 0x246   :  { %747 = vst [vmem:[#allocation12 + $0x70] sm:$0xff] %v731_v48 }
 0x247   :  { %1331 = shalt.err (!%p1328_p2)
}
 0x248   :  { %s1332_s17 = scalar_lea.hbm %s1495_s6, 2048 }
 0x249   :  { %p1333_p3 = scmp.ne.s32.totalorder %s1495_s6, %s1332_s17  ;;  %p1336_p4 = scmp.lt.u32.totalorder %s1332_s17, %s1495_s6 }
 0x24b   :  { %p1338_p5 = pnand %p1336_p4, %p1333_p3 }
 0x24d   :  { %1341 = shalt.err (!%p1338_p5)
}
 0x24e   :  { %760 = dma.vmem_to_hbm [thread:$0]  %s755_s12, 2048, %s1495_s6, [#allocation5], %s1351_s7, %s1351_s7, %s1352_s8  }
 0x24f   :  { %1348 = dma.done.wait [#allocation5], 2048  }
 0x250   :  { %1349 = vsyncadd [#allocation5], 4294965248 }
 0x251   :  { %764 = vsyncpa [#allocation4], 1 }
 0x252   :  { %765 = vsyncpa [#allocation7], 1 }
 0x253   :  { %766 = vsyncpa [#allocation10], 1 }
 0x254   :  { %767 = vsyncpa [#allocation5], 1 }

</bundles_post_ra>
